<compile_context>
chip_gen: v5e
topology: v5e:2x2
jax: 0.10.0
libtpu: 0.0.40
codegen_flags: <defaults>
</compile_context>

<pallas_src>
import functools
import math

import numpy as np
import jax
import jax.numpy as jnp
from jax import lax
from jax.experimental import pallas as pl
from jax.experimental.pallas import tpu as pltpu

# ---- synthetic model constants (module uses len(model_const['mod_elements'])+5) ----
MODEL_CONST = {"mod_elements": ["C", "H", "N", "O", "S", "P"]}  # deterministic stand-in
PTM_DIM = len(MODEL_CONST["mod_elements"]) + 5  # 11
HIDDEN_DIM = 32
BATCH = 2
SEQ = 8


def _enhanced_ptm_kernel(x_ref, w_ref, out_ref, *, hidden, seg):
    """Whole (flattened) problem in a single gridless invocation.

    x_ref  : (B*S, H+P+1+B)  packed activations [seq | ptm | 1 | onehot(batch)]
    w_ref  : (H+P+1+B, 3*seg) fused block weight (q | k | v segments, each seg lanes)
    out_ref: (B*S, H)
    """
    x = x_ref[...]
    # One fused projection matmul -> q, k, v (+ biases + mask columns) at once.
    qkv = jnp.dot(x, w_ref[...], preferred_element_type=jnp.float32)   # (BS, 3*seg)

    q = qkv[:, 0:seg]          # lanes [0,H): scaled q, [H,H+B): onehot(batch_i), rest 0
    k = qkv[:, seg:2 * seg]    # lanes [0,H): k,        [H,H+B): -1e30*(1-onehot), rest 0
    v = qkv[:, 2 * seg:2 * seg + hidden]

    # Q@K^T over the full 128-lane segment: real scores + block-diagonal batch
    # mask come out of the same MXU pass (padding lanes contribute exactly 0).
    scores = lax.dot_general(
        q, k, dimension_numbers=(((1,), (1,)), ((), ())),
        preferred_element_type=jnp.float32)                             # (BS, BS)

    # numerically stabilized softmax, normalization deferred past P@V
    m = jnp.max(scores, axis=-1, keepdims=True)
    p = jnp.exp(scores - m)
    denom = jnp.sum(p, axis=-1, keepdims=True)
    attended = jnp.dot(p, v, preferred_element_type=jnp.float32)        # (BS, H) unnormalized

    # exact reciprocal (approx=True would exceed the 1e-4 self-check)
    x_seq = x[:, 0:hidden]                                              # residual input
    out_ref[...] = (x_seq + attended * pl.reciprocal(denom, approx=False)).astype(out_ref.dtype)


def fuse_params(params, ptm_dim, hidden_dim, batch):
    """One-time host-side folding of all Linears + scale + mask into one weight."""
    w_emb, b_emb, w_q, b_q, w_k, b_k, w_v, b_v = (np.asarray(p, np.float32) for p in params)
    H, P, B = hidden_dim, ptm_dim, batch
    seg = ((H + B + 127) // 128) * 128            # lane-tile aligned segment width
    in_dim = H + P + 1 + B
    scale = np.float32(1.0 / math.sqrt(float(H)))

    w = np.zeros((in_dim, 3 * seg), np.float32)
    # Q from seq features (softmax 1/sqrt(H) pre-folded)
    w[0:H, 0:H] = w_q * scale
    # K / V from ptm features with the ptm_embedding Linear algebraically folded in
    w[H:H + P, seg:seg + H] = w_emb @ w_k
    w[H:H + P, 2 * seg:2 * seg + H] = w_emb @ w_v
    # all biases via the ones column
    r1 = H + P
    w[r1, 0:H] = (b_q * scale).reshape(-1)
    w[r1, seg:seg + H] = (b_emb @ w_k + b_k).reshape(-1)
    w[r1, 2 * seg:2 * seg + H] = (b_emb @ w_v + b_v).reshape(-1)
    # block-diagonal (per-batch) softmax mask via the one-hot batch columns
    eye = np.eye(B, dtype=np.float32)
    w[r1 + 1:r1 + 1 + B, H:H + B] = eye                              # q_ext = onehot(batch_i)
    w[r1 + 1:r1 + 1 + B, seg + H:seg + H + B] = -1e30 * (1.0 - eye)  # k_ext masks cross-batch
    return jnp.asarray(w), seg


@jax.jit
def enhanced_ptm_embedding(ptm_features, seq_features, w_fused):
    """ptm_features: [B,S,P] f32; seq_features: [B,S,H] f32; w_fused from fuse_params."""
    B, S, P = ptm_features.shape
    H = seq_features.shape[-1]
    BS = B * S
    seg = w_fused.shape[1] // 3

    # per-call activation packing: [seq | ptm | 1 | onehot(batch)]
    ones = jnp.ones((BS, 1), jnp.float32)
    onehot = jnp.asarray(np.repeat(np.eye(B, dtype=np.float32), S, axis=0))  # trace-time const
    x_cat = jnp.concatenate(
        [seq_features.reshape(BS, H), ptm_features.reshape(BS, P), ones, onehot], axis=1)

    kernel = functools.partial(_enhanced_ptm_kernel, hidden=H, seg=seg)
    vmem = pl.BlockSpec(memory_space=pltpu.MemorySpace.VMEM)
    out2d = pl.pallas_call(
        kernel,
        out_shape=jax.ShapeDtypeStruct((BS, H), jnp.float32),
        in_specs=[vmem, vmem],
        out_specs=vmem,
    )(x_cat, w_fused)
    return out2d.reshape(B, S, H)


def init_params(key, ptm_dim, hidden_dim):
    """Deterministic Linear params, stored as (W[in,out], b[1,out]) pairs."""
    ks = jax.random.split(key, 8)

    def linear(kw, kb, fan_in, fan_out):
        bound = 1.0 / math.sqrt(fan_in)
        w = jax.random.uniform(kw, (fan_in, fan_out), jnp.float32, -bound, bound)
        b = jax.random.uniform(kb, (1, fan_out), jnp.float32, -bound, bound)
        return w, b

    w_emb, b_emb = linear(ks[0], ks[1], ptm_dim, hidden_dim)   # ptm_embedding
    w_q, b_q = linear(ks[2], ks[3], hidden_dim, hidden_dim)    # attention.query
    w_k, b_k = linear(ks[4], ks[5], hidden_dim, hidden_dim)    # attention.key
    w_v, b_v = linear(ks[6], ks[7], hidden_dim, hidden_dim)    # attention.value
    return (w_emb, b_emb, w_q, b_q, w_k, b_k, w_v, b_v)


def reference(ptm_features, seq_features, params):
    """Unfused formula matching the PyTorch module semantics."""
    w_emb, b_emb, w_q, b_q, w_k, b_k, w_v, b_v = params
    emb = ptm_features @ w_emb + b_emb
    q = seq_features @ w_q + b_q
    k = emb @ w_k + b_k
    v = emb @ w_v + b_v
    scores = jnp.einsum("bqd,bkd->bqk", q, k) / math.sqrt(HIDDEN_DIM)
    attn = jax.nn.softmax(scores, axis=-1)
    attended = jnp.einsum("bqk,bkd->bqd", attn, v)
    return seq_features + attended


if __name__ == "__main__":
    key = jax.random.PRNGKey(0)
    k_ptm, k_seq, k_params = jax.random.split(key, 3)

    ptm_features = jax.random.normal(k_ptm, (BATCH, SEQ, PTM_DIM), jnp.float32)
    seq_features = jax.random.normal(k_seq, (BATCH, SEQ, HIDDEN_DIM), jnp.float32)
    params = init_params(k_params, PTM_DIM, HIDDEN_DIM)

    # one-time fused-parameter build, hoisted out of the per-call path
    w_fused, _ = fuse_params(params, PTM_DIM, HIDDEN_DIM, BATCH)

    out = enhanced_ptm_embedding(ptm_features, seq_features, w_fused)
    out = jax.block_until_ready(out)

    ref = reference(ptm_features, seq_features, params)
    assert out.shape == (BATCH, SEQ, HIDDEN_DIM)
    assert jnp.allclose(out, ref, atol=1e-4, rtol=1e-4), "mismatch vs reference"

    print("KERNEL_OK")
</pallas_src>

<mosaic_0001>
module attributes {stable_mosaic.version = 11 : i64} {
  func.func @_enhanced_ptm_kernel(%arg0: memref<16x46xf32, #tpu.memory_space<vmem>>, %arg1: memref<46x384xf32, #tpu.memory_space<vmem>>, %arg2: memref<16x32xf32, #tpu.memory_space<vmem>>) attributes {dimension_semantics = [], scalar_prefetch = 0 : i64, scratch_operands = 0 : i64, tpu.core_type = #tpu.core_type<tc>} {
    %c0 = arith.constant 0 : index
    %c0_0 = arith.constant 0 : index
    %0 = vector.load %arg0[%c0, %c0_0] : memref<16x46xf32, #tpu.memory_space<vmem>>, vector<16x46xf32>
    %c0_1 = arith.constant 0 : index
    %c0_2 = arith.constant 0 : index
    %1 = vector.load %arg1[%c0_1, %c0_2] : memref<46x384xf32, #tpu.memory_space<vmem>>, vector<46x384xf32>
    %cst = arith.constant dense<0.000000e+00> : vector<16x384xf32>
    %2 = tpu.matmul %0, %1, %cst {dimension_numbers = #tpu.dot_dimension_numbers<[1], [0], [0], [1], [0, 0, 1, 1], [], []>} : vector<16x46xf32>, vector<46x384xf32>, vector<16x384xf32> -> vector<16x384xf32>
    %3 = vector.extract_strided_slice %2 {offsets = [0, 0], sizes = [16, 128], strides = [1, 1]} : vector<16x384xf32> to vector<16x128xf32>
    %4 = vector.extract_strided_slice %2 {offsets = [0, 128], sizes = [16, 128], strides = [1, 1]} : vector<16x384xf32> to vector<16x128xf32>
    %5 = vector.extract_strided_slice %2 {offsets = [0, 256], sizes = [16, 32], strides = [1, 1]} : vector<16x384xf32> to vector<16x32xf32>
    %cst_3 = arith.constant dense<0.000000e+00> : vector<16x16xf32>
    %6 = tpu.matmul %3, %4, %cst_3 {dimension_numbers = #tpu.dot_dimension_numbers<[1], [1], [0], [0], [0, 0, 1, 0], [], []>} : vector<16x128xf32>, vector<16x128xf32>, vector<16x16xf32> -> vector<16x16xf32>
    %cst_4 = arith.constant dense<0xFF800000> : vector<16xf32>
    %7 = vector.multi_reduction <maximumf>, %6, %cst_4 [1] : vector<16x16xf32> to vector<16xf32>
    %8 = vector.shape_cast %7 : vector<16xf32> to vector<16x1xf32>
    %9 = vector.broadcast %8 : vector<16x1xf32> to vector<16x16xf32>
    %10 = arith.subf %6, %9 : vector<16x16xf32>
    %11 = math.exp %10 : vector<16x16xf32>
    %cst_5 = arith.constant dense<0.000000e+00> : vector<16xf32>
    %12 = vector.multi_reduction <add>, %11, %cst_5 [1] : vector<16x16xf32> to vector<16xf32>
    %13 = vector.shape_cast %12 : vector<16xf32> to vector<16x1xf32>
    %cst_6 = arith.constant dense<0.000000e+00> : vector<16x32xf32>
    %14 = tpu.matmul %11, %5, %cst_6 {dimension_numbers = #tpu.dot_dimension_numbers<[1], [0], [0], [1], [0, 0, 1, 1], [], []>} : vector<16x16xf32>, vector<16x32xf32>, vector<16x32xf32> -> vector<16x32xf32>
    %15 = vector.extract_strided_slice %0 {offsets = [0, 0], sizes = [16, 32], strides = [1, 1]} : vector<16x46xf32> to vector<16x32xf32>
    %16 = tpu.reciprocal %13 : vector<16x1xf32> -> vector<16x1xf32>
    %17 = vector.broadcast %16 : vector<16x1xf32> to vector<16x32xf32>
    %18 = arith.mulf %14, %17 : vector<16x32xf32>
    %19 = arith.addf %15, %18 : vector<16x32xf32>
    %c0_7 = arith.constant 0 : index
    %c0_8 = arith.constant 0 : index
    %20 = vector.load %arg2[%c0_7, %c0_8] : memref<16x32xf32, #tpu.memory_space<vmem>>, vector<16x32xf32>
    tpu.vector_store %arg2[%c0_7, %c0_8], %19 {strides = array<i32>} : memref<16x32xf32, #tpu.memory_space<vmem>>, vector<16x32xf32>,
    return
  }
}

</mosaic_0001>

<bundles_post_ra>
// kernel: enhanced_ptm_embedding.1
= control target key start
LH: loop header
LB: loop body
LE: loop exit
PB: predicated region body
PF: predicated region fallthrough
CT: control target
= control target key end

     0   :  { %7 = vsyncpa [#allocation3], 0  ;;  %s400_s0 = inlined_call_operand.vmem [shape: f32[16,46], index: 0, kind: input, shape index: {}]   ;;  %s401_s1 = inlined_call_operand.hbm [shape: f32[46,384], index: 1, kind: input, shape index: {}]   ;;  %s402_s2 = inlined_call_operand.hbm [shape: f32[16,32], index: 2, kind: output, shape index: {}]  }
   0x1   :  { %8 = vsyncpa [#allocation4], 0  ;;  %s15_s11 = sshll.u32 %s401_s1, 4  ;;  %s338_s12 = smov [#allocation2]   ;;  %s16_s11 = int_to_ptr.hbm [resolvable:$true] %s15_s11 }
   0x2   :  { %s17_s13 = sshll.u32 %s338_s12, 4  ;;  %s339_s14 = smov 384   ;;  %s18_s13 = int_to_ptr.vmem [resolvable:$true] %s17_s13 }
   0x3   :  { %s340_s15 = smov 24  }
   0x4   :  { %23 = dma.hbm_to_vmem [thread:$0]  %s16_s11, 2304, %s18_s13, [#allocation3], %s339_s14, %s339_s14, %s340_s15  }
   0x5   :  { %334 = dma.done.wait [#allocation3], 2304  }
   0x6   :  { %335 = vsyncadd [#allocation3], 4294964992  ;;  %vm55_vm0 = vcmask 1045504   ;;  %v46_v0 = vld [vmem:[#allocation2 + $0x80] sm:$0x3f]  ;;  %v43_v1 = vld [vmem:[#allocation2 + $0x68] sm:$0xff] }
   0x7   :  { %262 = vmatpush.msk.msra.mxu1 %vm55_vm0, %v46_v0  ;;  %v45_v2 = vld [vmem:[#allocation2 + $0x78] sm:$0x3f]  ;;  %v40_v3 = vld [vmem:[#allocation2 + $0x50] sm:$0xff]  ;;  %v42_v4 = vld [vmem:[#allocation2 + $0x60] sm:$0xff]  ;;  %vm48_vm1 = vcmask 375808   ;;  %vm157_vm2 = vcmask 130048  }
   0x8   :  { %259 = vmatpush.msk.msra.mxu0 %vm55_vm0, %v45_v2  ;;  %v39_v5 = vld [vmem:[#allocation2 + $0x48] sm:$0xff]  ;;  %v37_v6 = vld [vmem:[#allocation2 + $0x38] sm:$0xff]  ;;  %v36_v7 = vld [vmem:[#allocation2 + $0x30] sm:$0xff]  ;;  %vm237_vm7 = vcmask 261120   ;;  %s246_s22 = sshll.u32 %s402_s2, 4  ;;  %s342_s23 = smov 128   ;;  %s247_s22 = int_to_ptr.hbm [resolvable:$true] %s246_s22 }
   0x9   :  { %99 = vmatpush.msra.mxu1 %v43_v1  ;;  %v34_v8 = vld [vmem:[#allocation2 + $0x20] sm:$0xff]  ;;  %v33_v9 = vld [vmem:[#allocation2 + $0x18] sm:$0xff]  ;;  %v31_v10 = vld [vmem:[#allocation2 + $0x8] sm:$0xff]  ;;  %s343_s24 = smov 8  }
   0xa   :  { %76 = vmatpush.msra.mxu0 %v42_v4  ;;  %v367_v11 = vld [vmem:[%s400_s0] sm:$0xff]  ;;  %v376_v13 = vld [vmem:[%s400_s0 + $0x8] sm:$0xff]  ;;  %v44_v15 = vld [vmem:[#allocation2 + $0x70] sm:$0xff]  ;;  %s341_s0 = smov [#allocation5]  }
   0xb   :  { %100 = vmatpush.msra.mxu1 %v40_v3  ;;  %v30_v12 = vld [vmem:[#allocation2] sm:$0xff]  ;;  %v47_v14 = vld [vmem:[#allocation2 + $0x88] sm:$0x3f]  ;;  %v41_v16 = vld [vmem:[#allocation2 + $0x58] sm:$0xff]  ;;  %s244_s19 = sshll.u32 %s341_s0, 4  ;;  %s245_s19 = int_to_ptr.vmem [resolvable:$true] %s244_s19 }
   0xc   :  { %77 = vmatpush.msra.mxu0 %v39_v5  ;;  %265 = vmatpush.msk.msra.mxu2 %vm55_vm0, %v47_v14  ;;  %v38_v17 = vld [vmem:[#allocation2 + $0x40] sm:$0xff]  ;;  %v35_v18 = vld [vmem:[#allocation2 + $0x28] sm:$0xff]  ;;  %v32_v19 = vld [vmem:[#allocation2 + $0x10] sm:$0xff] }
   0xd   :  { %101 = vmatpush.msra.mxu1 %v37_v6 }
   0xe   :  { %78 = vmatpush.msra.mxu0 %v36_v7  ;;  %122 = vmatpush.msra.mxu2 %v44_v15 }
   0xf   :  { %102 = vmatpush.msra.mxu1 %v34_v8 }
  0x10   :  { %79 = vmatpush.msra.mxu0 %v33_v9  ;;  %123 = vmatpush.msra.mxu2 %v41_v16 }
  0x11   :  { %103 = vmatpush.msra.mxu1 %v31_v10 }
  0x12   :  { %263 = vmatmul.msk.f32.vlgmr.msra.gmra.mxu1 %vm48_vm1, %v367_v11  ;;  %80 = vmatpush.msra.mxu0 %v30_v12 }
  0x13   :  { %260 = vmatmul.msk.f32.vlgmr.msra.gmra.mxu0 %vm48_vm1, %v367_v11  ;;  %124 = vmatpush.msra.mxu2 %v38_v17 }
  0x15   :  { %125 = vmatpush.msra.mxu2 %v35_v18 }
  0x17   :  { %126 = vmatpush.msra.mxu2 %v32_v19 }
  0x18   :  { %266 = vmatmul.msk.f32.vlgmr.msra.gmra.mxu2 %vm48_vm1, %v367_v11 }
  0x1a   :  { %264 = vmatmul.msk.f32.gmra.mxu1 %vm48_vm1, %v376_v13 }
  0x1b   :  { %261 = vmatmul.msk.f32.gmra.mxu0 %vm48_vm1, %v376_v13 }
  0x20   :  { %267 = vmatmul.msk.f32.gmra.mxu2 %vm48_vm1, %v376_v13 }
  0x8f   :  { %v105_v20 = vpop.f32.mrf.mxu1 }
  0x90   :  { %v82_v21 = vpop.f32.mrf.mxu0 }
  0x97   :  { %v108_v22 = vpop.f32.mrf.mxu1 }
  0x98   :  { %148 = vmatpush.xpose.msrb.mxu0 %v108_v22  ;;  %270 = vmatpush.xpose.msra.mxu3 %v108_v22  ;;  %v85_v23 = vpop.f32.mrf.mxu0 }
  0x9b   :  { %v128_v28 = vpop.f32.mrf.mxu2 }
  0x9c   :  { %149 = vmatpush.xpose.msrb.mxu0 %v105_v20  ;;  %271 = vmatpush.xpose.msra.mxu3 %v105_v20 }
  0x9f   :  { %150 = vmatmul.f32.vlgmr.msrb.gmra.mxu0 %v82_v21  ;;  %153 = vmatmul.f32.vlgmr.msra.gmra.mxu3 %v85_v23 }
  0xa3   :  { %v131_v29 = vpop.f32.mrf.mxu2 }
  0xa4   :  { %196 = vmatpush.msrb.mxu3 %v131_v29 }
  0xa6   :  { %197 = vmatpush.msrb.mxu3 %v128_v28 }
 0x11c   :  { %v151_v24 = vpop.f32.mrf.mxu0 }
 0x11d   :  { %v158_v25 = vsel %vm157_vm2, %v151_v24, -inf }
 0x11e   :  { %159 = vmax.xlane.f32.xlu0 %v158_v25 }
 0x122   :  { %v154_v26 = vpop.f32.mrf.mxu3 }
 0x123   :  { %v161_v27 = vsel %vm157_vm2, %v154_v26, -inf }
 0x126   :  { %162 = vmax.xlane.f32.xlu0 %v161_v27 }
 0x191   :  { %v160_v30 = vpop.xlane.xlu0 %159 }
 0x192   :  { %v164_v31 = vsub.f32 %v151_v24, %v160_v30 }
 0x194   :  { %v166_v32 = vmul.f32 1.442695, %v164_v31 }
 0x196   :  { %278 = vpow2.f32 %v166_v32 }
 0x199   :  { %v163_v33 = vpop.xlane.xlu0 %162 }
 0x19a   :  { %v165_v34 = vsub.f32 %v154_v26, %v163_v33 }
 0x19c   :  { %v279_v35 = vpop.eup %278  ;;  %v168_v36 = vmul.f32 1.442695, %v165_v34 }
 0x19d   :  { %268 = vmatmul.msk.f32.vlgmr.msrb.gmra.mxu3 %vm157_vm2, %v279_v35  ;;  %v170_v37 = vsel %vm157_vm2, %v279_v35, 0.0 }
 0x19e   :  { %280 = vpow2.f32 %v168_v36  ;;  %171 = vadd.xlane.f32.xlu1 %v170_v37 }
 0x1a4   :  { %v281_v38 = vpop.eup %280 }
 0x1a5   :  { %269 = vmatmul.msk.f32.gmra.mxu3 %vm157_vm2, %v281_v38  ;;  %v173_v39 = vsel %vm157_vm2, %v281_v38, 0.0 }
 0x1a6   :  { %174 = vadd.xlane.f32.xlu1 %v173_v39 }
 0x211   :  { %v172_v40 = vpop.xlane.xlu1 %171 }
 0x212   :  { %282 = vrcp.f32 %v172_v40  ;;  %v216_v45 = vand.u32 2147483648, %v172_v40  ;;  %v214_v47 = vand.u32 2147483647, %v172_v40  ;;  %vm210_vm4 = vweird.f32 %v172_v40 }
 0x214   :  { %v217_v51 = vor.u32 1.1754944e-38, %v216_v45  ;;  %vm215_vm6 = vcmp.eq.f32.partialorder %v214_v47, 8.507059e+37 }
 0x218   :  { %v283_v41 = vpop.eup %282 }
 0x219   :  { %v206_v42 = vmul.f32 %v283_v41, %v172_v40  ;;  %v175_v43 = vpop.xlane.xlu1 %174  ;;  %vm211_vm3 = vweird.f32 %v283_v41 }
 0x21a   :  { %284 = vrcp.f32 %v175_v43  ;;  %vm212_vm5 = vmor %vm210_vm4, %vm211_vm3  ;;  %v230_v57 = vand.u32 2147483648, %v175_v43  ;;  %v228_v60 = vand.u32 2147483647, %v175_v43  ;;  %vm224_vm9 = vweird.f32 %v175_v43 }
 0x21b   :  { %v207_v44 = vsub.f32 1.0, %v206_v42 }
 0x21c   :  { %v231_v62 = vor.u32 1.1754944e-38, %v230_v57  ;;  %vm229_vm11 = vcmp.eq.f32.partialorder %v228_v60, 8.507059e+37 }
 0x21d   :  { %v208_v46 = vmul.f32 %v283_v41, %v207_v44 }
 0x21f   :  { %v209_v48 = vadd.f32 %v283_v41, %v208_v46 }
 0x220   :  { %v285_v49 = vpop.eup %284  ;;  %v199_v50 = vpop.f32.mrf.mxu3 }
 0x221   :  { %v220_v52 = vmul.f32 %v285_v49, %v175_v43  ;;  %v213_v53 = vsel %vm212_vm5, %v283_v41, %v209_v48  ;;  %vm225_vm8 = vweird.f32 %v285_v49 }
 0x222   :  { %v218_v54 = vsel %vm215_vm6, %v217_v51, %v213_v53  ;;  %vm226_vm10 = vmor %vm224_vm9, %vm225_vm8 }
 0x223   :  { %v221_v55 = vsub.f32 1.0, %v220_v52  ;;  %v233_v56 = vmul.f32 %v218_v54, %v199_v50 }
 0x225   :  { %v222_v58 = vmul.f32 %v285_v49, %v221_v55  ;;  %v235_v59 = vadd.f32 %v233_v56, %v367_v11 }
 0x227   :  { %238 = vst.msk [vmem:[#allocation5] sm:$0xff] %vm237_vm7, %v235_v59  ;;  %v223_v61 = vadd.f32 %v285_v49, %v222_v58 }
 0x228   :  { %v202_v0 = vpop.f32.mrf.mxu3 }
 0x229   :  { %v227_v63 = vsel %vm226_vm10, %v285_v49, %v223_v61 }
 0x22a   :  { %v232_v1 = vsel %vm229_vm11, %v231_v62, %v227_v63 }
 0x22b   :  { %v234_v2 = vmul.f32 %v232_v1, %v202_v0 }
 0x22d   :  { %v236_v3 = vadd.f32 %v234_v2, %v376_v13 }
 0x22f   :  { %239 = vst.msk [vmem:[#allocation5 + $0x8] sm:$0xff] %vm237_vm7, %v236_v3 }
 0x230   :  { %252 = dma.vmem_to_hbm [thread:$0]  %s245_s19, 256, %s247_s22, [#allocation4], %s342_s23, %s342_s23, %s343_s24  }
 0x231   :  { %336 = dma.done.wait [#allocation4], 256  }
 0x232   :  { %337 = vsyncadd [#allocation4], 4294967040 }
 0x233   :  { %257 = vsyncpa [#allocation3], 1 }
 0x234   :  { %258 = vsyncpa [#allocation4], 1 }

</bundles_post_ra>
